<compile_context>
chip_gen: v7x
topology: tpu7x:2x2x1
jax: 0.10.0
libtpu: 0.0.40
codegen_flags: <defaults>
</compile_context>

<pallas_src>
import jax
import jax.numpy as jnp
import numpy as np
from jax.experimental import pallas as pl
from jax.experimental.pallas import tpu as pltpu


def _gat_kernel(x_ref, wb_ref, a_ref, mask_ref, sel_ref, o_ref):
    """Single invocation (no grid); all batches and heads fused.

    x_ref   : (B, N, in_dim)     node features (mxu_dtype)
    wb_ref  : (in_dim + 1, H*D)  head-stacked weights with bias row appended (mxu_dtype)
    a_ref   : (H*D, 2H)          block-diagonal stack of per-head attention vectors (mxu_dtype)
    mask_ref: (H*N, H*D)         block-diagonal head mask (f32): 1 where row-head == col-head
    sel_ref : (H*D, D)           H vertically stacked identity(D) matrices (mxu_dtype)
    o_ref   : (B, N, D)          mean-over-heads output (f32)
    """
    B, N, in_dim = x_ref.shape
    HD, two_h = a_ref.shape
    H = two_h // 2
    D = HD // H
    mm_dtype = wb_ref.dtype                                   # dtype fed to the MXU

    # ---- fused per-head linear: ONE lane-dense MXU matmul over all heads & batches ----
    x = x_ref[...].reshape(B * N, in_dim)                     # (B*N, in_dim)
    w = wb_ref[:in_dim, :]                                    # (in_dim, H*D)
    b = wb_ref[in_dim:in_dim + 1, :]                          # (1, H*D)
    h_all = jnp.dot(x, w, preferred_element_type=jnp.float32) + b    # (B*N, H*D) f32
    h_mm = h_all.astype(mm_dtype)

    # ---- per-head attention-logit sources: ONE MXU matmul against the block-diag stack ----
    #   s[:, h] = <h_head_h, a1_h>,  s[:, H+h] = <h_head_h, a2_h>
    s = jnp.dot(h_mm, a_ref[...], preferred_element_type=jnp.float32)  # (B*N, 2H) f32

    # ---- all B*H attention matrices, one head-batched softmax pass (f32) ----
    st = jnp.swapaxes(s.reshape(B, N, 2 * H), 1, 2)           # (B, 2H, N)  minor-dims transpose
    e = st[:, :H, :, None] + st[:, H:, None, :]               # (B, H, N, N): s1[j] + s2[k]
    e = e.reshape(B * H, N, N)
    e = jnp.where(e > 0, e, 0.2 * e)                          # leaky_relu(0.2)
    e = e - jnp.max(e, axis=-1, keepdims=True)
    p = jnp.exp(e)
    inv = pl.reciprocal(jnp.sum(p, axis=-1, keepdims=True), approx=True)
    attn = p * inv                                            # (B*H, N, N) f32
    # TODO(synk): F.dropout(p=0.6) skipped -- eval-mode forward (identity).

    # ---- head-fused attn @ h: one batched MXU matmul + block-diagonal head selection ----
    attn_rows = attn.reshape(B, H * N, N)                     # heads stacked along sublanes
    h3 = h_mm.reshape(B, N, HD)                               # (B, N, H*D), lane-dense
    z = jnp.einsum("brk,bkc->brc", attn_rows.astype(mm_dtype), h3,
                   preferred_element_type=jnp.float32)        # (B, H*N, H*D)

    # Keep only the matching head block of each row, then collapse the H*D columns
    # onto D with the stacked-identity matmul:  y[b, h*N+j, :] = (attn_bh @ h_bh)[j, :]
    zm = (z * mask_ref[...]).reshape(B * H * N, HD).astype(mm_dtype)
    y = jnp.dot(zm, sel_ref[...], preferred_element_type=jnp.float32)  # (B*H*N, D)

    # ---- mean over heads (H is static; unrolled adds == what a head-axis sum lowers to) ----
    y4 = y.reshape(B, H, N, D)
    out = y4[:, 0]
    for h in range(1, H):
        out = out + y4[:, h]
    o_ref[...] = (out * (1.0 / H)).astype(o_ref.dtype)


def gat_forward(x, W, bias, a1, a2, *, mxu_dtype=jnp.bfloat16):
    """x: (B, N, in_dim); W: (H, in_dim, D); bias/a1/a2: (H, 1, D) -> (B, N, D) f32."""
    B, N, in_dim = x.shape
    H, _, D = W.shape
    HD = H * D

    # ---- parameter packing (head-fused, lane-dense layouts); head h -> columns h*D:(h+1)*D ----
    W_stacked = jnp.transpose(W, (1, 0, 2)).reshape(in_dim, HD)          # (in_dim, H*D)
    b_stacked = bias.reshape(H, D).reshape(1, HD)                        # (1, H*D)
    WB = jnp.concatenate([W_stacked, b_stacked], axis=0).astype(mxu_dtype)

    a1_f = a1.reshape(H, D).astype(jnp.float32)
    a2_f = a2.reshape(H, D).astype(jnp.float32)
    eye_h = jnp.eye(H, dtype=jnp.float32)
    A1 = (a1_f[:, :, None] * eye_h[:, None, :]).reshape(HD, H)           # block-diagonal
    A2 = (a2_f[:, :, None] * eye_h[:, None, :]).reshape(HD, H)
    A = jnp.concatenate([A1, A2], axis=1).astype(mxu_dtype)              # (H*D, 2H)

    # Constants for the fused attn@h: block-diagonal head mask (rows=(h,j), cols=(h',d))
    # and the stacked-identity column selector.
    row_head = jnp.arange(H * N, dtype=jnp.int32)[:, None] // N
    col_head = jnp.arange(HD, dtype=jnp.int32)[None, :] // D
    head_mask = (row_head == col_head).astype(jnp.float32)               # (H*N, H*D)
    head_sel = jnp.tile(jnp.eye(D, dtype=jnp.float32), (H, 1)).astype(mxu_dtype)  # (H*D, D)

    x_mm = x.astype(mxu_dtype)

    cost = pl.CostEstimate(
        flops=(2 * B * N * in_dim * HD            # fused linear
               + 2 * B * N * HD * 2 * H           # attention-logit sources
               + 2 * B * (H * N) * N * HD         # attn_rows @ h_all
               + 2 * (B * H * N) * HD * D),       # block-diag column collapse
        transcendentals=B * H * N * N,            # exp
        bytes_accessed=int(x_mm.size * x_mm.dtype.itemsize
                           + WB.size * WB.dtype.itemsize
                           + A.size * A.dtype.itemsize
                           + head_mask.size * 4
                           + head_sel.size * head_sel.dtype.itemsize
                           + B * N * D * 4),
    )

    # No grid: whole arrays live in VMEM (tiny working set at these shapes); this removes
    # the per-grid-step pipeline overhead that dominated at B=2, N=8.
    return pl.pallas_call(
        _gat_kernel,
        out_shape=jax.ShapeDtypeStruct((B, N, D), jnp.float32),
        compiler_params=pltpu.CompilerParams(
            vmem_limit_bytes=32 * 1024 * 1024,    # safe scoped limit on v5e/v6e/v7x
        ),
        cost_estimate=cost,
    )(x_mm, WB, A, head_mask, head_sel)


def gat_reference(x, W, bias, a1, a2):
    """Pure-JAX f32 reference of the PyTorch forward (eval mode)."""
    H = W.shape[0]
    outs = []
    for h in range(H):
        h_out = x @ W[h] + bias[h]                                   # (B, N, D)
        s1 = jnp.sum(h_out * a1[h], axis=-1, keepdims=True)          # (B, N, 1)
        s2 = jnp.sum(h_out * a2[h], axis=-1, keepdims=True)          # (B, N, 1)
        e = s1 + jnp.swapaxes(s2, -1, -2)                            # (B, N, N)
        e = jnp.where(e > 0, e, 0.2 * e)
        attn = jax.nn.softmax(e, axis=-1)
        outs.append(attn @ h_out)
    return jnp.mean(jnp.stack(outs, axis=1), axis=1)


if __name__ == "__main__":
    # Small shapes consistent with the module's forward: x is (B, num_nodes, in_dim).
    # H * out_dim = 128 -> lane-dense fused weight matrix.
    B, N, in_dim, out_dim, n_heads = 2, 8, 16, 32, 4

    key = jax.random.PRNGKey(0)
    kx, kw, kb, ka = jax.random.split(key, 4)

    x = jax.random.normal(kx, (B, N, in_dim), dtype=jnp.float32)

    # Deterministic synthetic parameters (nn.Linear weights/bias per head;
    # the (2*out_dim, 1) attention vector split into its two halves).
    W = jax.random.normal(kw, (n_heads, in_dim, out_dim), dtype=jnp.float32) * 0.1
    bias = jax.random.normal(kb, (n_heads, 1, out_dim), dtype=jnp.float32) * 0.1
    a_full = jax.random.normal(ka, (n_heads, 2 * out_dim, 1), dtype=jnp.float32) * 0.1
    a1 = a_full[:, :out_dim, 0][:, None, :]   # (H, 1, D)
    a2 = a_full[:, out_dim:, 0][:, None, :]   # (H, 1, D)

    out = jax.jit(gat_forward)(x, W, bias, a1, a2)
    out = jax.block_until_ready(out)

    ref = gat_reference(x, W, bias, a1, a2)
    # Tolerance accounts for bf16 MXU operands (f32 accumulation) and the approx (EUP)
    # reciprocal in the softmax normalization; pass mxu_dtype=jnp.float32 for tighter parity.
    np.testing.assert_allclose(np.asarray(out), np.asarray(ref), rtol=2e-2, atol=2e-2)

    print("KERNEL_OK")
</pallas_src>

<mosaic_0001>
module attributes {stable_mosaic.version = 11 : i64} {
  func.func @_gat_kernel(%arg0: memref<2x8x16xbf16, #tpu.memory_space<vmem>>, %arg1: memref<17x128xbf16, #tpu.memory_space<vmem>>, %arg2: memref<128x8xbf16, #tpu.memory_space<vmem>>, %arg3: memref<32x128xf32, #tpu.memory_space<vmem>>, %arg4: memref<128x32xbf16, #tpu.memory_space<vmem>>, %arg5: memref<2x8x32xf32, #tpu.memory_space<vmem>>) attributes {dimension_semantics = [], scalar_prefetch = 0 : i64, scratch_operands = 0 : i64, tpu.core_type = #tpu.core_type<tc>} {
    %c0 = arith.constant 0 : index
    %c0_0 = arith.constant 0 : index
    %c0_1 = arith.constant 0 : index
    %0 = vector.load %arg0[%c0, %c0_0, %c0_1] : memref<2x8x16xbf16, #tpu.memory_space<vmem>>, vector<2x8x16xbf16>
    %1 = vector.shape_cast %0 : vector<2x8x16xbf16> to vector<16x16xbf16>
    %c0_2 = arith.constant 0 : index
    %c0_3 = arith.constant 0 : index
    %2 = vector.load %arg1[%c0_2, %c0_3] : memref<17x128xbf16, #tpu.memory_space<vmem>>, vector<16x128xbf16>
    %c16 = arith.constant 16 : index
    %c0_4 = arith.constant 0 : index
    %3 = vector.load %arg1[%c16, %c0_4] : memref<17x128xbf16, #tpu.memory_space<vmem>>, vector<1x128xbf16>
    %cst = arith.constant dense<0.000000e+00> : vector<16x128xf32>
    %4 = tpu.matmul %1, %2, %cst {dimension_numbers = #tpu.dot_dimension_numbers<[1], [0], [0], [1], [0, 0, 1, 1], [], []>} : vector<16x16xbf16>, vector<16x128xbf16>, vector<16x128xf32> -> vector<16x128xf32>
    %5 = arith.extf %3 : vector<1x128xbf16> to vector<1x128xf32>
    %6 = vector.broadcast %5 : vector<1x128xf32> to vector<16x128xf32>
    %7 = arith.addf %4, %6 : vector<16x128xf32>
    %8 = arith.truncf %7 : vector<16x128xf32> to vector<16x128xbf16>
    %c0_5 = arith.constant 0 : index
    %c0_6 = arith.constant 0 : index
    %9 = vector.load %arg2[%c0_5, %c0_6] : memref<128x8xbf16, #tpu.memory_space<vmem>>, vector<128x8xbf16>
    %cst_7 = arith.constant dense<0.000000e+00> : vector<16x8xf32>
    %10 = tpu.matmul %8, %9, %cst_7 {dimension_numbers = #tpu.dot_dimension_numbers<[1], [0], [0], [1], [0, 0, 1, 1], [], []>} : vector<16x128xbf16>, vector<128x8xbf16>, vector<16x8xf32> -> vector<16x8xf32>
    %11 = vector.shape_cast %10 : vector<16x8xf32> to vector<2x8x8xf32>
    %12 = tpu.transpose %11, [0, 2, 1] : vector<2x8x8xf32> -> vector<2x8x8xf32>
    %13 = vector.extract_strided_slice %12 {offsets = [0, 0, 0], sizes = [2, 4, 8], strides = [1, 1, 1]} : vector<2x8x8xf32> to vector<2x4x8xf32>
    %14 = vector.shape_cast %13 : vector<2x4x8xf32> to vector<2x4x8x1xf32>
    %15 = vector.extract_strided_slice %12 {offsets = [0, 4, 0], sizes = [2, 4, 8], strides = [1, 1, 1]} : vector<2x8x8xf32> to vector<2x4x8xf32>
    %16 = vector.shape_cast %15 : vector<2x4x8xf32> to vector<2x4x1x8xf32>
    %17 = vector.broadcast %14 : vector<2x4x8x1xf32> to vector<2x4x8x8xf32>
    %18 = vector.broadcast %16 : vector<2x4x1x8xf32> to vector<2x4x8x8xf32>
    %19 = arith.addf %17, %18 : vector<2x4x8x8xf32>
    %20 = vector.shape_cast %19 : vector<2x4x8x8xf32> to vector<8x8x8xf32>
    %cst_8 = arith.constant 0.000000e+00 : f32
    %21 = vector.broadcast %cst_8 : f32 to vector<8x8x8xf32>
    %22 = arith.cmpf ogt, %20, %21 : vector<8x8x8xf32>
    %cst_9 = arith.constant 2.000000e-01 : f32
    %23 = vector.broadcast %cst_9 : f32 to vector<8x8x8xf32>
    %24 = arith.mulf %23, %20 : vector<8x8x8xf32>
    %25 = arith.select %22, %20, %24 : vector<8x8x8xi1>, vector<8x8x8xf32>
    %cst_10 = arith.constant dense<0xFF800000> : vector<8x8xf32>
    %26 = vector.multi_reduction <maximumf>, %25, %cst_10 [2] : vector<8x8x8xf32> to vector<8x8xf32>
    %27 = vector.shape_cast %26 : vector<8x8xf32> to vector<8x8x1xf32>
    %28 = vector.broadcast %27 : vector<8x8x1xf32> to vector<8x8x8xf32>
    %29 = arith.subf %25, %28 : vector<8x8x8xf32>
    %30 = math.exp %29 : vector<8x8x8xf32>
    %cst_11 = arith.constant dense<0.000000e+00> : vector<8x8xf32>
    %31 = vector.multi_reduction <add>, %30, %cst_11 [2] : vector<8x8x8xf32> to vector<8x8xf32>
    %32 = vector.shape_cast %31 : vector<8x8xf32> to vector<8x8x1xf32>
    %33 = tpu.reciprocal %32 {approx = true} : vector<8x8x1xf32> -> vector<8x8x1xf32>
    %34 = vector.broadcast %33 : vector<8x8x1xf32> to vector<8x8x8xf32>
    %35 = arith.mulf %30, %34 : vector<8x8x8xf32>
    %36 = vector.shape_cast %35 : vector<8x8x8xf32> to vector<2x32x8xf32>
    %37 = vector.shape_cast %8 : vector<16x128xbf16> to vector<2x8x128xbf16>
    %38 = arith.truncf %36 : vector<2x32x8xf32> to vector<2x32x8xbf16>
    "tpu.trace_start"() <{level = 10 : i32, message = "brk,bkc->brc"}> : () -> ()
    %cst_12 = arith.constant dense<0.000000e+00> : vector<2x32x128xf32>
    %39 = tpu.matmul %38, %37, %cst_12 {dimension_numbers = #tpu.dot_dimension_numbers<[2], [1], [1], [2], [0, 0, 0, 1, 1, 2], [0], [0]>} : vector<2x32x8xbf16>, vector<2x8x128xbf16>, vector<2x32x128xf32> -> vector<2x32x128xf32>
    "tpu.trace_stop"() : () -> ()
    %c0_13 = arith.constant 0 : index
    %c0_14 = arith.constant 0 : index
    %40 = vector.load %arg3[%c0_13, %c0_14] : memref<32x128xf32, #tpu.memory_space<vmem>>, vector<32x128xf32>
    %41 = vector.shape_cast %40 : vector<32x128xf32> to vector<1x32x128xf32>
    %42 = vector.broadcast %41 : vector<1x32x128xf32> to vector<2x32x128xf32>
    %43 = arith.mulf %39, %42 : vector<2x32x128xf32>
    %44 = vector.shape_cast %43 : vector<2x32x128xf32> to vector<64x128xf32>
    %45 = arith.truncf %44 : vector<64x128xf32> to vector<64x128xbf16>
    %c0_15 = arith.constant 0 : index
    %c0_16 = arith.constant 0 : index
    %46 = vector.load %arg4[%c0_15, %c0_16] : memref<128x32xbf16, #tpu.memory_space<vmem>>, vector<128x32xbf16>
    %cst_17 = arith.constant dense<0.000000e+00> : vector<64x32xf32>
    %47 = tpu.matmul %45, %46, %cst_17 {dimension_numbers = #tpu.dot_dimension_numbers<[1], [0], [0], [1], [0, 0, 1, 1], [], []>} : vector<64x128xbf16>, vector<128x32xbf16>, vector<64x32xf32> -> vector<64x32xf32>
    %48 = vector.shape_cast %47 : vector<64x32xf32> to vector<2x4x8x32xf32>
    %49 = vector.extract_strided_slice %48 {offsets = [0, 0, 0, 0], sizes = [2, 1, 8, 32], strides = [1, 1, 1, 1]} : vector<2x4x8x32xf32> to vector<2x1x8x32xf32>
    %50 = vector.shape_cast %49 : vector<2x1x8x32xf32> to vector<2x8x32xf32>
    %51 = vector.extract_strided_slice %48 {offsets = [0, 1, 0, 0], sizes = [2, 1, 8, 32], strides = [1, 1, 1, 1]} : vector<2x4x8x32xf32> to vector<2x1x8x32xf32>
    %52 = vector.shape_cast %51 : vector<2x1x8x32xf32> to vector<2x8x32xf32>
    %53 = arith.addf %50, %52 : vector<2x8x32xf32>
    %54 = vector.extract_strided_slice %48 {offsets = [0, 2, 0, 0], sizes = [2, 1, 8, 32], strides = [1, 1, 1, 1]} : vector<2x4x8x32xf32> to vector<2x1x8x32xf32>
    %55 = vector.shape_cast %54 : vector<2x1x8x32xf32> to vector<2x8x32xf32>
    %56 = arith.addf %53, %55 : vector<2x8x32xf32>
    %57 = vector.extract_strided_slice %48 {offsets = [0, 3, 0, 0], sizes = [2, 1, 8, 32], strides = [1, 1, 1, 1]} : vector<2x4x8x32xf32> to vector<2x1x8x32xf32>
    %58 = vector.shape_cast %57 : vector<2x1x8x32xf32> to vector<2x8x32xf32>
    %59 = arith.addf %56, %58 : vector<2x8x32xf32>
    %cst_18 = arith.constant 2.500000e-01 : f32
    %60 = vector.broadcast %cst_18 : f32 to vector<2x8x32xf32>
    %61 = arith.mulf %59, %60 : vector<2x8x32xf32>
    %c0_19 = arith.constant 0 : index
    %c0_20 = arith.constant 0 : index
    %c0_21 = arith.constant 0 : index
    %62 = vector.load %arg5[%c0_19, %c0_20, %c0_21] : memref<2x8x32xf32, #tpu.memory_space<vmem>>, vector<2x8x32xf32>
    tpu.vector_store %arg5[%c0_19, %c0_20, %c0_21], %61 {strides = array<i32>} : memref<2x8x32xf32, #tpu.memory_space<vmem>>, vector<2x8x32xf32>,
    return
  }
}

</mosaic_0001>

<bundles_post_ra>
// kernel: gat_forward.1
= control target key start
LH: loop header
LB: loop body
LE: loop exit
PB: predicated region body
PF: predicated region fallthrough
CT: control target
= control target key end

     0   :  { %v1025_v1 = vmov 0.0   ;;  %vm1026_vm0 = vmmov 0   ;;  %vm43_vm1 = vcmask 130048   ;;  %s1175_s0 = inlined_call_operand.vmem [shape: bf16[2,8,16], index: 0, kind: input, shape index: {}]   ;;  %s1176_s1 = inlined_call_operand.vmem [shape: bf16[17,128], index: 1, kind: input, shape index: {}]   ;;  %s1177_s2 = inlined_call_operand.vmem [shape: bf16[128,8], index: 2, kind: input, shape index: {}]   ;;  %s1178_s3 = inlined_call_operand.vmem [shape: f32[32,128], index: 3, kind: input, shape index: {}]   ;;  %s1179_s4 = inlined_call_operand.vmem [shape: bf16[128,32], index: 4, kind: input, shape index: {}]   ;;  %s1180_s5 = inlined_call_operand.hbm [shape: f32[2,8,32], index: 5, kind: output, shape index: {}]  }
   0x1   :  { %v951_v0 = vld [vmem:[%s1176_s1] sm:$0xff]   ;;  %881 = vmatprep.subr.bf16.mxu1 %v1025_v1  ;;  %883 = vmatprep.mubr.msk.bf16.mxu1 %vm1026_vm0, %v1025_v1  ;;  %v954_v4 = vld [vmem:[%s1177_s2 + $0x8] sm:$0xff]   ;;  %v955_v5 = vld [vmem:[%s1177_s2 + $0x10] sm:$0xff]  }
   0x2   :  { %v952_v2 = vld [vmem:[%s1175_s0] sm:$0xff]   ;;  %882 = vmatpush3.bf16.msra.mxu1 %v951_v0  ;;  %v956_v6 = vld [vmem:[%s1177_s2 + $0x18] sm:$0xff]  }
   0x3   :  { %v953_v3 = vld [vmem:[%s1177_s2] sm:$0xff]   ;;  %887 = vmatprep.subr.bf16.mxu1 %v1025_v1 }
   0x5   :  { %884 = vmatmul.mubr.msk.bf16.vlgmr.msra.gmra.mrb[0].mxu1 %vm43_vm1, %v952_v2 }
   0x6   :  { %888 = vmatpush3.bf16.msra.mxu1 %v953_v3  ;;  %903 = vmatprep.mubr.msk.bf16.mxu1 %vm1026_vm0, %v1025_v1 }
   0x7   :  { %889 = vmatprep.subr.bf16.mxu1 %v1025_v1 }
   0xa   :  { %890 = vmatpush3.bf16.msra.mxu1 %v954_v4 }
   0xb   :  { %891 = vmatprep.subr.bf16.mxu1 %v1025_v1 }
   0xe   :  { %892 = vmatpush3.bf16.msra.mxu1 %v955_v5 }
   0xf   :  { %893 = vmatprep.subr.bf16.mxu1 %v1025_v1 }
  0x10   :  { %10 = vsyncpa [#allocation3], 0  ;;  %v957_v7 = vld [vmem:[%s1177_s2 + $0x20] sm:$0xff]   ;;  %v958_v8 = vld [vmem:[%s1177_s2 + $0x28] sm:$0xff]   ;;  %v28_v11 = vlaneseq  ;;  %vm542_vm2 = vcmask 1043456   ;;  %vm438_vm3 = vcmask 64512  }
  0x11   :  { %v959_v9 = vld [vmem:[%s1177_s2 + $0x30] sm:$0xff]   ;;  %v960_v10 = vld [vmem:[%s1177_s2 + $0x38] sm:$0xff]   ;;  %v26_v13 = vld [vmem:[%s1176_s1 + $0x8] sm:$0x1]  ;;  %v1027_v45 = vmov 1966171168  }
  0x12   :  { %894 = vmatpush3.bf16.msra.mxu1 %v956_v6  ;;  %v29_v12 = vshrl.u32 %v28_v11, 7  ;;  %v27_v14 = vunpack.c.l.bf16 %v26_v13  ;;  %v318_v46 = vunpack.c.l.s4 %v1027_v45  ;;  %vm806_vm12 = vcmask 261120  }
  0x13   :  { %895 = vmatprep.subr.bf16.mxu1 %v1025_v1 }
  0x14   :  { %v1094_v15 = vsub.s32 0, %v29_v12  ;;  %v274_v32 = vsub.s32 2, %v29_v12  ;;  %v267_v36 = vsub.s32 1, %v29_v12  ;;  %v281_v38 = vsub.s32 3, %v29_v12 }
  0x15   :  { %v319_v47 = vunpack.c.0.s8 %v318_v46 }
  0x16   :  { %896 = vmatpush3.bf16.msra.mxu1 %v957_v7  ;;  %v31_v16 = vrot.slane %v27_v14, %v1094_v15 }
  0x17   :  { %897 = vmatprep.subr.bf16.mxu1 %v1025_v1  ;;  %v322_v49 = vsub.s32 %v319_v47, %v29_v12 }
  0x1a   :  { %898 = vmatpush3.bf16.msra.mxu1 %v958_v8 }
  0x1b   :  { %899 = vmatprep.subr.bf16.mxu1 %v1025_v1 }
  0x1e   :  { %900 = vmatpush3.bf16.msra.mxu1 %v959_v9 }
  0x1f   :  { %901 = vmatprep.subr.bf16.mxu1 %v1025_v1 }
  0x22   :  { %902 = vmatpush3.bf16.msra.mxu1 %v960_v10 }
  0xd8   :  { %v81_v17 = vpop.f32.mrb[0].mxu1 }
  0xd9   :  { %v82_v18 = vadd.f32 %v81_v17, %v31_v16  ;;  %v885_v19 = vpop.f32.mrb[1].mxu1 }
  0xda   :  { %v84_v20 = vpop.f32.mrb[2].mxu1 }
  0xdb   :  { %v850_v21 = vpack.c.bf16 %v82_v18, %v82_v18  ;;  %v85_v22 = vadd.f32 %v84_v20, %v31_v16  ;;  %v886_v23 = vpop.f32.mrb[3].mxu1 }
  0xdd   :  { %v88_v24 = vpack.c.bf16 %v85_v22, %v82_v18  ;;  %943 = vmatprep.subr.msk.bf16.mxu1 %vm542_vm2, %v850_v21  ;;  %v544_v25 = vsel %vm542_vm2, %v850_v21, 0  ;;  %v851_v26 = vpack.c.bf16 %v85_v22, %v85_v22 }
  0xdf   :  { %904 = vmatmul.mubr.bf16.vlgmr.msra.gmra.mrb[4].mxu1 %v88_v24  ;;  %944 = vmatprep.subr.msk.bf16.mxu0 %vm542_vm2, %v851_v26  ;;  %v602_v27 = vsel %vm542_vm2, %v851_v26, 0 }
  0xe0   :  { %908 = vmatpush3.bf16.msra.mxu1 %v544_v25  ;;  %914 = vmatpush3.bf16.msra.mxu0 %v602_v27 }
 0x1b2   :  { %v187_v28 = vpop.f32.mrb[4].mxu1 }
 0x1b3   :  { %194 = vxpose.xlu0.b32.start.end [1/1] (short) (narrow) %v187_v28, 8  ;;  %v905_v29 = vpop.f32.mrb[5].mxu1 }
 0x1b4   :  { %v190_v30 = vpop.f32.mrb[6].mxu1 }
 0x1b5   :  { %v906_v31 = vpop.f32.mrb[7].mxu1 }
 0x1b7   :  { %226 = vxpose.xlu0.b32.start.end [1/1] (short) (narrow) %v190_v30, 8 }
 0x233   :  { %v210_v33 = vpop.trf.xlu0 }
 0x234   :  { %v261_v34 = vrot.slane %v210_v33, %v1094_v15  ;;  %v275_v35 = vrot.slane %v210_v33, %v274_v32  ;;  %v268_v37 = vrot.slane %v210_v33, %v267_v36  ;;  %v282_v40 = vrot.slane %v210_v33, %v281_v38 }
 0x235   :  { %v316_v48 = vcombine.high %v210_v33, %v210_v33 }
 0x236   :  { %263 = vbcast.lane.b32.xlu1 %v261_v34, 256  ;;  %277 = vbcast.lane.b32.xlu0 %v275_v35, 256 }
 0x237   :  { %v242_v39 = vpop.trf.xlu0  ;;  %v323_v50 = vrot.slane %v316_v48, %v322_v49 }
 0x238   :  { %v289_v41 = vrot.slane %v242_v39, %v1094_v15  ;;  %v296_v42 = vrot.slane %v242_v39, %v267_v36  ;;  %v303_v43 = vrot.slane %v242_v39, %v274_v32  ;;  %v310_v44 = vrot.slane %v242_v39, %v281_v38 }
 0x239   :  { %v331_v51 = vrot.slane %v323_v50, %v322_v49  ;;  %v324_v52 = vcombine.high %v323_v50, %v323_v50  ;;  %v341_v55 = vcombine.high %v242_v39, %v242_v39 }
 0x23a   :  { %270 = vbcast.lane.b32.xlu1 %v268_v37, 256 }
 0x23b   :  { %v339_v53 = vcombine.high %v331_v51, %v331_v51  ;;  %v338_v54 = vrot.slane %v324_v52, %v322_v49  ;;  %v369_v56 = vrot.slane %v331_v51, %v1094_v15  ;;  %v348_v63 = vrot.slane %v341_v55, %v322_v49 }
 0x23d   :  { %v377_v57 = vrot.slane %v339_v53, %v1094_v15  ;;  %v373_v62 = vrot.slane %v338_v54, %v1094_v15  ;;  %v340_v2 = vcombine.high %v338_v54, %v338_v54  ;;  %v356_v7 = vrot.slane %v348_v63, %v322_v49 }
 0x23e   :  { %284 = vbcast.lane.b32.xlu1 %v282_v40, 256  ;;  %v349_v8 = vcombine.high %v348_v63, %v348_v63 }
 0x23f   :  { %v381_v10 = vrot.slane %v340_v2, %v1094_v15  ;;  %v385_v19 = vrot.slane %v356_v7, %v1094_v15  ;;  %v364_v27 = vcombine.high %v356_v7, %v356_v7 }
 0x240   :  { %v363_v20 = vrot.slane %v349_v8, %v322_v49 }
 0x241   :  { %v393_v33 = vrot.slane %v364_v27, %v1094_v15 }
 0x242   :  { %291 = vbcast.lane.b32.xlu1 %v289_v41, 256  ;;  %v389_v26 = vrot.slane %v363_v20, %v1094_v15  ;;  %v365_v34 = vcombine.high %v363_v20, %v363_v20 }
 0x244   :  { %v397_v40 = vrot.slane %v365_v34, %v1094_v15 }
 0x246   :  { %298 = vbcast.lane.b32.xlu1 %v296_v42, 256 }
 0x24a   :  { %305 = vbcast.lane.b32.xlu1 %v303_v43, 256 }
 0x24e   :  { %312 = vbcast.lane.b32.xlu1 %v310_v44, 256 }
 0x2a8   :  { %v264_v58 = vpop.permute.xlu1 %263  ;;  %v278_v59 = vpop.permute.xlu0 %277 }
 0x2a9   :  { %v406_v60 = vadd.f32 %v369_v56, %v264_v58  ;;  %v408_v61 = vadd.f32 %v377_v57, %v278_v59 }
 0x2ab   :  { %v422_v0 = vmul.f32 0.2, %v406_v60  ;;  %v424_v1 = vmul.f32 0.2, %v408_v61  ;;  %vm414_vm4 = vcmp.gt.f32.partialorder %v406_v60, 0.0  ;;  %vm416_vm5 = vcmp.gt.f32.partialorder %v408_v61, 0.0 }
 0x2ac   :  { %v271_v3 = vpop.permute.xlu1 %270 }
 0x2ad   :  { %v407_v4 = vadd.f32 %v373_v62, %v271_v3  ;;  %v430_v5 = vsel %vm414_vm4, %v406_v60, %v422_v0  ;;  %v432_v11 = vsel %vm416_vm5, %v408_v61, %v424_v1 }
 0x2ae   :  { %v439_v6 = vsel %vm438_vm3, %v430_v5, -inf  ;;  %v445_v17 = vsel %vm438_vm3, %v432_v11, -inf }
 0x2af   :  { %v423_v9 = vmul.f32 0.2, %v407_v4  ;;  %440 = vmax.xlane.f32.xlu1 %v439_v6  ;;  %vm415_vm6 = vcmp.gt.f32.partialorder %v407_v4, 0.0 }
 0x2b0   :  { %v285_v12 = vpop.permute.xlu1 %284 }
 0x2b1   :  { %v409_v13 = vadd.f32 %v381_v10, %v285_v12  ;;  %v431_v14 = vsel %vm415_vm6, %v407_v4, %v423_v9 }
 0x2b2   :  { %v442_v16 = vsel %vm438_vm3, %v431_v14, -inf }
 0x2b3   :  { %v425_v18 = vmul.f32 0.2, %v409_v13  ;;  %443 = vmax.xlane.f32.xlu0 %v442_v16  ;;  %446 = vmax.xlane.f32.xlu1 %v445_v17  ;;  %vm417_vm7 = vcmp.gt.f32.partialorder %v409_v13, 0.0 }
 0x2b4   :  { %v292_v21 = vpop.permute.xlu1 %291 }
 0x2b5   :  { %v410_v22 = vadd.f32 %v385_v19, %v292_v21  ;;  %v433_v23 = vsel %vm417_vm7, %v409_v13, %v425_v18 }
 0x2b6   :  { %v448_v24 = vsel %vm438_vm3, %v433_v23, -inf }
 0x2b7   :  { %v426_v25 = vmul.f32 0.2, %v410_v22  ;;  %449 = vmax.xlane.f32.xlu1 %v448_v24  ;;  %vm418_vm8 = vcmp.gt.f32.partialorder %v410_v22, 0.0  ;;  %v961_v24 = vld [vmem:[%s1179_s4] sm:$0xff]  }
 0x2b8   :  { %v299_v28 = vpop.permute.xlu1 %298  ;;  %919 = vmatprep.subr.bf16.mxu0 %v961_v24 }
 0x2b9   :  { %v411_v29 = vadd.f32 %v389_v26, %v299_v28  ;;  %v434_v30 = vsel %vm418_vm8, %v410_v22, %v426_v25 }
 0x2ba   :  { %v451_v31 = vsel %vm438_vm3, %v434_v30, -inf }
 0x2bb   :  { %v427_v32 = vmul.f32 0.2, %v411_v29  ;;  %452 = vmax.xlane.f32.xlu1 %v451_v31  ;;  %vm419_vm9 = vcmp.gt.f32.partialorder %v411_v29, 0.0 }
 0x2bc   :  { %v306_v35 = vpop.permute.xlu1 %305 }
 0x2bd   :  { %v412_v36 = vadd.f32 %v393_v33, %v306_v35  ;;  %v435_v37 = vsel %vm419_vm9, %v411_v29, %v427_v32 }
 0x2be   :  { %v454_v38 = vsel %vm438_vm3, %v435_v37, -inf }
 0x2bf   :  { %v428_v39 = vmul.f32 0.2, %v412_v36  ;;  %455 = vmax.xlane.f32.xlu1 %v454_v38  ;;  %vm420_vm10 = vcmp.gt.f32.partialorder %v412_v36, 0.0 }
 0x2c0   :  { %v313_v41 = vpop.permute.xlu1 %312 }
 0x2c1   :  { %v413_v42 = vadd.f32 %v397_v40, %v313_v41  ;;  %v436_v43 = vsel %vm420_vm10, %v412_v36, %v428_v39 }
 0x2c2   :  { %v457_v44 = vsel %vm438_vm3, %v436_v43, -inf }
 0x2c3   :  { %v429_v45 = vmul.f32 0.2, %v413_v42  ;;  %458 = vmax.xlane.f32.xlu0 %v457_v44  ;;  %vm421_vm11 = vcmp.gt.f32.partialorder %v413_v42, 0.0 }
 0x2c5   :  { %v437_v46 = vsel %vm421_vm11, %v413_v42, %v429_v45 }
 0x2c6   :  { %v460_v47 = vsel %vm438_vm3, %v437_v46, -inf }
 0x2c7   :  { %461 = vmax.xlane.f32.xlu1 %v460_v47 }
 0x33c   :  { %v441_v48 = vpop.xlane.xlu1 %440 }
 0x33d   :  { %v463_v49 = vsub.f32 %v430_v5, %v441_v48 }
 0x33f   :  { %v471_v50 = vmul.f32 1.442695, %v463_v49 }
 0x340   :  { %v447_v51 = vpop.xlane.xlu1 %446  ;;  %v444_v52 = vpop.xlane.xlu0 %443 }
 0x341   :  { %969 = vpow2.f32 %v471_v50  ;;  %v465_v15 = vsub.f32 %v432_v11, %v447_v51  ;;  %v464_v53 = vsub.f32 %v431_v14, %v444_v52 }
 0x343   :  { %v475_v54 = vmul.f32 1.442695, %v465_v15  ;;  %v473_v55 = vmul.f32 1.442695, %v464_v53  ;;  %v962_v15 = vld [vmem:[%s1179_s4 + $0x8] sm:$0xff]   ;;  %v963_v53 = vld [vmem:[%s1179_s4 + $0x10] sm:$0xff]  }
 0x344   :  { %v450_v56 = vpop.xlane.xlu1 %449 }
 0x345   :  { %971 = vpow2.f32 %v475_v54  ;;  %v466_v57 = vsub.f32 %v433_v23, %v450_v56  ;;  %v964_v54 = vld [vmem:[%s1179_s4 + $0x18] sm:$0xff]   ;;  %v966_v56 = vld [vmem:[%s1179_s4 + $0x28] sm:$0xff]  }
 0x346   :  { %973 = vpow2.f32 %v473_v55  ;;  %v965_v55 = vld [vmem:[%s1179_s4 + $0x20] sm:$0xff]  }
 0x347   :  { %v477_v58 = vmul.f32 1.442695, %v466_v57  ;;  %v967_v57 = vld [vmem:[%s1179_s4 + $0x30] sm:$0xff]  }
 0x348   :  { %v453_v59 = vpop.xlane.xlu1 %452 }
 0x349   :  { %975 = vpow2.f32 %v477_v58  ;;  %v467_v60 = vsub.f32 %v434_v30, %v453_v59  ;;  %v968_v58 = vld [vmem:[%s1179_s4 + $0x38] sm:$0xff]  }
 0x34b   :  { %v970_v61 = vpop.eup %969  ;;  %v479_v62 = vmul.f32 1.442695, %v467_v60  ;;  %v655_v60 = vld [vmem:[%s1178_s3 + $0x10] sm:$0xff] }
 0x34c   :  { %v456_v63 = vpop.xlane.xlu1 %455  ;;  %v487_v0 = vsel %vm438_vm3, %v970_v61, 0.0 }
 0x34d   :  { %977 = vpow2.f32 %v479_v62  ;;  %v468_v1 = vsub.f32 %v435_v37, %v456_v63  ;;  %488 = vadd.xlane.f32.xlu0 %v487_v0  ;;  %v653_v63 = vld [vmem:[%s1178_s3] sm:$0xff]  ;;  %v654_v0 = vld [vmem:[%s1178_s3 + $0x8] sm:$0xff] }
 0x34f   :  { %v972_v2 = vpop.eup %971  ;;  %v481_v3 = vmul.f32 1.442695, %v468_v1 }
 0x350   :  { %v974_v4 = vpop.eup %973  ;;  %v459_v5 = vpop.xlane.xlu0 %458  ;;  %v493_v6 = vsel %vm438_vm3, %v972_v2, 0.0 }
 0x351   :  { %979 = vpow2.f32 %v481_v3  ;;  %v469_v7 = vsub.f32 %v436_v43, %v459_v5  ;;  %494 = vadd.xlane.f32.xlu0 %v493_v6  ;;  %v490_v8 = vsel %vm438_vm3, %v974_v4, 0.0 }
 0x352   :  { %491 = vadd.xlane.f32.xlu1 %v490_v8 }
 0x353   :  { %v976_v9 = vpop.eup %975  ;;  %v483_v10 = vmul.f32 1.442695, %v469_v7 }
 0x354   :  { %v462_v11 = vpop.xlane.xlu1 %461  ;;  %v496_v12 = vsel %vm438_vm3, %v976_v9, 0.0 }
 0x355   :  { %981 = vpow2.f32 %v483_v10  ;;  %v470_v13 = vsub.f32 %v437_v46, %v462_v11 }
 0x356   :  { %497 = vadd.xlane.f32.xlu1 %v496_v12 }
 0x357   :  { %v978_v14 = vpop.eup %977  ;;  %v485_v16 = vmul.f32 1.442695, %v470_v13 }
 0x358   :  { %v499_v17 = vsel %vm438_vm3, %v978_v14, 0.0 }
 0x359   :  { %983 = vpow2.f32 %v485_v16  ;;  %500 = vadd.xlane.f32.xlu0 %v499_v17 }
 0x35b   :  { %v980_v18 = vpop.eup %979 }
 0x35c   :  { %v502_v19 = vsel %vm438_vm3, %v980_v18, 0.0 }
 0x35d   :  { %503 = vadd.xlane.f32.xlu1 %v502_v19 }
 0x35f   :  { %v982_v20 = vpop.eup %981 }
 0x360   :  { %v505_v21 = vsel %vm438_vm3, %v982_v20, 0.0 }
 0x361   :  { %506 = vadd.xlane.f32.xlu0 %v505_v21 }
 0x363   :  { %v984_v22 = vpop.eup %983 }
 0x364   :  { %v508_v23 = vsel %vm438_vm3, %v984_v22, 0.0 }
 0x365   :  { %509 = vadd.xlane.f32.xlu1 %v508_v23 }
 0x3da   :  { %v489_v25 = vpop.xlane.xlu0 %488 }
 0x3db   :  { %985 = vrcp.f32 %v489_v25 }
 0x3de   :  { %v495_v27 = vpop.xlane.xlu0 %494 }
 0x3df   :  { %v492_v26 = vpop.xlane.xlu1 %491 }
 0x3e0   :  { %987 = vrcp.f32 %v492_v26 }
 0x3e1   :  { %989 = vrcp.f32 %v495_v27 }
 0x3e3   :  { %v498_v28 = vpop.xlane.xlu1 %497 }
 0x3e4   :  { %991 = vrcp.f32 %v498_v28 }
 0x3e5   :  { %v986_v30 = vpop.eup %985 }
 0x3e6   :  { %v501_v29 = vpop.xlane.xlu0 %500  ;;  %v519_v33 = vmul.f32 %v986_v30, %v970_v61  ;;  %v656_v61 = vld [vmem:[%s1178_s3 + $0x18] sm:$0xff]  ;;  %s1028_s3 = smov [#allocation2]  }
 0x3e7   :  { %993 = vrcp.f32 %v501_v29  ;;  %s814_s4 = sshll.u32 %s1028_s3, 4  ;;  %s815_s4 = int_to_ptr.vmem [resolvable:$true] %s814_s4 }
 0x3e8   :  { %s1001_s10 = scalar_lea.vmem %s815_s4, 256  ;;  %p1006_p1 = scmp.lt.s32.totalorder %s815_s4, %s815_s4 }
 0x3e9   :  { %p1002_p0 = scmp.ne.s32.totalorder %s815_s4, %s1001_s10  ;;  %p1007_p2 = scmp.lt.s32.totalorder %s1001_s10, %s1001_s10 }
 0x3ea   :  { %v988_v31 = vpop.eup %987  ;;  %v504_v32 = vpop.xlane.xlu1 %503 }
 0x3eb   :  { %995 = vrcp.f32 %v504_v32  ;;  %v520_v34 = vmul.f32 %v988_v31, %v974_v4  ;;  %v990_v35 = vpop.eup %989  ;;  %p1008_p3 = por %p1007_p2, %p1006_p1 }
 0x3ec   :  { %v521_v39 = vmul.f32 %v990_v35, %v972_v2 }
 0x3ed   :  { %v532_v36 = vpack.c.bf16 %v520_v34, %v519_v33  ;;  %p1009_p4 = pnand %p1008_p3, %p1002_p0 }
 0x3ee   :  { %v992_v37 = vpop.eup %991  ;;  %v507_v38 = vpop.xlane.xlu0 %506 }
 0x3ef   :  { %v522_v40 = vmul.f32 %v992_v37, %v976_v9  ;;  %909 = vmatprep.mubr.msk.bf16.mxu1 %vm438_vm3, %v532_v36  ;;  %997 = vrcp.f32 %v507_v38 }
 0x3f1   :  { %v533_v41 = vpack.c.bf16 %v522_v40, %v521_v39  ;;  %v994_v43 = vpop.eup %993 }
 0x3f2   :  { %v510_v42 = vpop.xlane.xlu1 %509  ;;  %v523_v45 = vmul.f32 %v994_v43, %v978_v14 }
 0x3f3   :  { %999 = vrcp.f32 %v510_v42  ;;  %910 = vmatmul.mubr.msk.bf16.vlgmr.msra.gmra.mrb[8].mxu1 %vm438_vm3, %v533_v41 }
 0x3f5   :  { %v996_v44 = vpop.eup %995 }
 0x3f6   :  { %v524_v46 = vmul.f32 %v996_v44, %v980_v18 }
 0x3f8   :  { %v534_v47 = vpack.c.bf16 %v524_v46, %v523_v45 }
 0x3f9   :  { %v998_v48 = vpop.eup %997 }
 0x3fa   :  { %915 = vmatprep.mubr.msk.bf16.mxu0 %vm438_vm3, %v534_v47  ;;  %v525_v50 = vmul.f32 %v998_v48, %v982_v20 }
 0x3fd   :  { %v1000_v49 = vpop.eup %999 }
 0x3fe   :  { %v526_v51 = vmul.f32 %v1000_v49, %v984_v22 }
 0x400   :  { %v535_v52 = vpack.c.bf16 %v526_v51, %v525_v50 }
 0x402   :  { %916 = vmatmul.mubr.msk.bf16.vlgmr.msra.gmra.mrb[0].mxu0 %vm438_vm3, %v535_v52 }
 0x403   :  { %920 = vmatpush3.bf16.msra.mxu0 %v961_v24 }
 0x404   :  { %921 = vmatprep.subr.bf16.mxu0 %v962_v15 }
 0x407   :  { %922 = vmatpush3.bf16.msra.mxu0 %v962_v15 }
 0x408   :  { %923 = vmatprep.subr.bf16.mxu0 %v963_v53 }
 0x40b   :  { %924 = vmatpush3.bf16.msra.mxu0 %v963_v53 }
 0x40c   :  { %925 = vmatprep.subr.bf16.mxu0 %v964_v54 }
 0x40f   :  { %926 = vmatpush3.bf16.msra.mxu0 %v964_v54 }
 0x410   :  { %927 = vmatprep.subr.bf16.mxu0 %v965_v55 }
 0x413   :  { %928 = vmatpush3.bf16.msra.mxu0 %v965_v55 }
 0x414   :  { %929 = vmatprep.subr.bf16.mxu0 %v966_v56 }
 0x417   :  { %930 = vmatpush3.bf16.msra.mxu0 %v966_v56 }
 0x418   :  { %931 = vmatprep.subr.bf16.mxu0 %v967_v57 }
 0x41b   :  { %932 = vmatpush3.bf16.msra.mxu0 %v967_v57 }
 0x41c   :  { %933 = vmatprep.subr.bf16.mxu0 %v968_v58 }
 0x41f   :  { %934 = vmatpush3.bf16.msra.mxu0 %v968_v58 }
 0x4c6   :  { %v911_v59 = vpop.f32.mrb[8].mxu1 }
 0x4c7   :  { %v580_v62 = vpop.f32.mrb[9].mxu1  ;;  %v659_v2 = vmul.f32 %v911_v59, %v655_v60 }
 0x4c8   :  { %v912_v1 = vpop.f32.mrb[10].mxu1  ;;  %v657_v5 = vmul.f32 %v653_v63, %v580_v62 }
 0x4c9   :  { %v660_v3 = vmul.f32 %v912_v1, %v656_v61  ;;  %v583_v4 = vpop.f32.mrb[11].mxu1 }
 0x4ca   :  { %v658_v6 = vmul.f32 %v654_v0, %v583_v4 }
 0x4cb   :  { %v666_v7 = vpack.c.bf16 %v660_v3, %v659_v2 }
 0x4cc   :  { %v665_v8 = vpack.c.bf16 %v658_v6, %v657_v5 }
 0x4ce   :  { %935 = vmatprep.mubr.bf16.mxu0 %v665_v8 }
 0x4cf   :  { %936 = vmatmul.mubr.bf16.vlgmr.msra.gmra.mrb[4].mxu0 %v666_v7 }
 0x4d5   :  { %v917_v9 = vpop.f32.mrb[0].mxu0 }
 0x4d6   :  { %v638_v10 = vpop.f32.mrb[1].mxu0  ;;  %v663_v12 = vmul.f32 %v917_v9, %v655_v60 }
 0x4d7   :  { %v918_v11 = vpop.f32.mrb[2].mxu0  ;;  %v661_v16 = vmul.f32 %v653_v63, %v638_v10 }
 0x4d8   :  { %v664_v13 = vmul.f32 %v918_v11, %v656_v61  ;;  %v641_v14 = vpop.f32.mrb[3].mxu0 }
 0x4d9   :  { %v662_v17 = vmul.f32 %v654_v0, %v641_v14 }
 0x4da   :  { %v668_v18 = vpack.c.bf16 %v664_v13, %v663_v12 }
 0x4db   :  { %v667_v19 = vpack.c.bf16 %v662_v17, %v661_v16 }
 0x4dd   :  { %939 = vmatprep.mubr.bf16.mxu0 %v667_v19 }
 0x4de   :  { %940 = vmatmul.mubr.bf16.gmra.mrb[8].mxu0 %v668_v18 }
 0x5a2   :  { %v937_v20 = vpop.f32.mrb[4].mxu0 }
 0x5a3   :  { %v767_v21 = vpop.f32.mrb[5].mxu0 }
 0x5a4   :  { %v938_v22 = vpop.f32.mrb[6].mxu0 }
 0x5a5   :  { %v770_v23 = vpop.f32.mrb[7].mxu0 }
 0x5a6   :  { %v798_v24 = vadd.f32 %v770_v23, %v767_v21 }
 0x5a8   :  { %v800_v25 = vadd.f32 %v937_v20, %v798_v24 }
 0x5aa   :  { %v802_v26 = vadd.f32 %v938_v22, %v800_v25 }
 0x5ac   :  { %v804_v27 = vmul.f32 0.25, %v802_v26 }
 0x5ae   :  { %807 = vst.msk [vmem:[#allocation2] sm:$0xff] %vm806_vm12, %v804_v27 }
 0x5b1   :  { %v941_v28 = vpop.f32.mrb[8].mxu0 }
 0x5b2   :  { %v783_v29 = vpop.f32.mrb[9].mxu0 }
 0x5b3   :  { %v942_v30 = vpop.f32.mrb[10].mxu0 }
 0x5b4   :  { %v786_v31 = vpop.f32.mrb[11].mxu0 }
 0x5b5   :  { %v799_v32 = vadd.f32 %v786_v31, %v783_v29 }
 0x5b7   :  { %v801_v33 = vadd.f32 %v941_v28, %v799_v32 }
 0x5b9   :  { %v803_v34 = vadd.f32 %v942_v30, %v801_v33 }
 0x5bb   :  { %v805_v35 = vmul.f32 0.25, %v803_v34 }
 0x5bd   :  { %808 = vst.msk [vmem:[#allocation2 + $0x8] sm:$0xff] %vm806_vm12, %v805_v35 }
 0x5be   :  { %1012 = shalt.err (!%p1009_p4)
}
 0x5bf   :  { %s1013_s13 = scalar_lea.hbm %s1180_s5, 256 }
 0x5c0   :  { %p1014_p5 = scmp.ne.s32.totalorder %s1180_s5, %s1013_s13  ;;  %p1017_p6 = scmp.lt.u32.totalorder %s1013_s13, %s1180_s5 }
 0x5c2   :  { %p1019_p7 = pnand %p1017_p6, %p1014_p5 }
 0x5c4   :  { %1022 = shalt.err (!%p1019_p7)
}
 0x5c5   :  { %s1029_s16 = smov 128   ;;  %s1030_s17 = smov 8  }
 0x5c6   :  { %820 = dma.vmem_to_hbm [thread:$0]  %s815_s4, 256, %s1180_s5, [#allocation3], %s1029_s16, %s1029_s16, %s1030_s17  }
 0x5c7   :  { %1023 = dma.done.wait [#allocation3], 256  }
 0x5c8   :  { %1024 = vsyncadd [#allocation3], 4294967040 }
 0x5c9   :  { %824 = vsyncpa [#allocation3], 1 }

</bundles_post_ra>
